<compile_context>
chip_gen: v7x
topology: tpu7x:2x2x1
jax: 0.10.0
libtpu: 0.0.40
codegen_flags: <defaults>
</compile_context>

<pallas_src>
import functools

import jax
import jax.numpy as jnp
from jax import lax
from jax.experimental import pallas as pl
from jax.experimental.pallas import tpu as pltpu


_ITER_K_MAX = 8                        # iterative selection for k <= this
_MAX_ROW_TILE = 512                    # sublane tile cap (multiple of 8)
_BLOCK_BYTE_BUDGET = 4 * 1024 * 1024   # in+out block budget per grid step


def _round_up(x, m):
    return ((x + m - 1) // m) * m


def _next_pow2(x):
    return 1 << max(0, (x - 1).bit_length())


def _bitonic_sort_desc(x, lane):
    """Full descending bitonic sort along the lane (last) axis.

    x    : (rows, n) value with n a power of two (padded with -inf)
    lane : (rows, n) int32 iota along the last axis
    """
    n = x.shape[-1]
    size = 2
    while size <= n:
        j = size // 2
        final = size == n          # last merge: every block sorts descending
        while j >= 1:
            # partner[i] = x[i ^ j]:
            #   lanes with (i & j) == 0 need x[i + j] -> roll by (n - j)
            #   lanes with (i & j) != 0 need x[i - j] -> roll by j
            fwd = pltpu.roll(x, shift=n - j, axis=1)   # out[i] = x[(i + j) % n]
            bwd = pltpu.roll(x, shift=j, axis=1)       # out[i] = x[(i - j) % n]
            is_lower = (lane & j) == 0
            partner = jnp.where(is_lower, fwd, bwd)
            mx = jnp.maximum(x, partner)
            mn = jnp.minimum(x, partner)
            if final:
                # (lane & size) == 0 for every lane -> take_max == is_lower.
                take_max = is_lower
            else:
                desc = (lane & size) == 0
                take_max = jnp.logical_not(jnp.logical_xor(desc, is_lower))
            x = jnp.where(take_max, mx, mn)
            j //= 2
        size *= 2
    return x


def _kmax_bitonic_kernel(x_ref, o_ref, *, k_pad):
    x = x_ref[...]                                   # (rows, L_pad)
    rows, n = x.shape
    lane = lax.broadcasted_iota(jnp.int32, (rows, n), 1)
    x_sorted = _bitonic_sort_desc(x, lane)
    o_ref[...] = x_sorted[:, :k_pad].astype(o_ref.dtype)


def _kmax_iter_kernel(x_ref, o_ref, *, k, k_pad):
    x = x_ref[...]                                   # (rows, L_pad)
    rows, n = x.shape
    lane = lax.broadcasted_iota(jnp.int32, (rows, n), 1)
    out_lane = lax.broadcasted_iota(jnp.int32, (rows, k_pad), 1)

    cur = x                                          # vreg-resident working copy
    out = jnp.full((rows, k_pad), -jnp.inf, dtype=x.dtype)
    # k is small (<= _ITER_K_MAX) and static -> fully unrolled, no concat.
    for step in range(k):
        m = jnp.max(cur, axis=-1, keepdims=True)                       # (rows, 1)
        # first occurrence of the max -> exactly one element removed per step
        idx = jnp.min(jnp.where(cur == m, lane, n), axis=-1, keepdims=True)
        cur = jnp.where(lane == idx, -jnp.inf, cur)
        out = jnp.where(out_lane == step, m, out)
    o_ref[...] = out.astype(o_ref.dtype)


def kmax_pool(x, k="half"):
    """x: (N, C, L) float array. Returns (N, C, k) top-k values along axis 2."""
    N, C, L = x.shape
    if isinstance(k, str) and k == "half":
        k = L // 2
    if k == 0:
        return jnp.zeros((N, C, 0), dtype=x.dtype)
    assert 0 < k <= L, f"k={k} out of range for L={L}"
    assert jnp.issubdtype(x.dtype, jnp.floating), "KMaxPool expects a float dtype"

    rows = N * C
    use_iter = k <= _ITER_K_MAX

    # Lane padding with -inf (sorts last, never enters top-k since k <= L).
    if use_iter:
        L_pad = _round_up(L, 128)
    else:
        L_pad = max(128, _next_pow2(L))
    k_pad = _round_up(k, 128)        # lane-dense output block; k_pad <= L_pad

    # Row tiling: multiples of 8 sublanes, capped so (in + out) blocks
    # (double-buffered by Pallas) comfortably fit v7x's 64 MiB VMEM.
    bytes_per_el = x.dtype.itemsize
    per_row_bytes = (L_pad + k_pad) * bytes_per_el
    max_rows_by_vmem = max(8, (_BLOCK_BYTE_BUDGET // per_row_bytes) // 8 * 8)
    row_tile = min(_MAX_ROW_TILE, max_rows_by_vmem, _round_up(rows, 8))
    rows_pad = _round_up(rows, row_tile)

    x2 = x.reshape(rows, L)
    if rows_pad != rows or L_pad != L:
        # Only pay for the padding copy when the shape actually needs it.
        x2 = jnp.pad(x2, ((0, rows_pad - rows), (0, L_pad - L)),
                     constant_values=-jnp.inf)

    if use_iter:
        kernel = functools.partial(_kmax_iter_kernel, k=k, k_pad=k_pad)
        passes = k
    else:
        kernel = functools.partial(_kmax_bitonic_kernel, k_pad=k_pad)
        log2n = L_pad.bit_length() - 1
        passes = log2n * (log2n + 1) // 2

    out = pl.pallas_call(
        kernel,
        out_shape=jax.ShapeDtypeStruct((rows_pad, k_pad), x.dtype),
        grid_spec=pltpu.PrefetchScalarGridSpec(
            num_scalar_prefetch=0,
            grid=(rows_pad // row_tile,),
            in_specs=[pl.BlockSpec((row_tile, L_pad), lambda r: (r, 0))],
            out_specs=pl.BlockSpec((row_tile, k_pad), lambda r: (r, 0)),
        ),
        compiler_params=pltpu.CompilerParams(
            dimension_semantics=("parallel",),
            vmem_limit_bytes=32 * 1024 * 1024,
        ),
        cost_estimate=pl.CostEstimate(
            flops=int(4 * rows_pad * L_pad * passes),
            transcendentals=0,
            bytes_accessed=int(rows_pad * (L_pad + k_pad) * bytes_per_el),
        ),
    )(x2)

    if rows_pad == rows and k_pad == k:
        return out.reshape(N, C, k)
    return out[:rows, :k].reshape(N, C, k)


if __name__ == "__main__":
    key = jax.random.PRNGKey(0)

    # NCL layout matching the Conv1d usage in vcdnn.py: (batch, channels, time)
    N, C, L = 2, 4, 16
    x = jax.random.normal(key, (N, C, L), dtype=jnp.float32)
    out = jax.block_until_ready(kmax_pool(x, k="half"))     # k = 8 -> iterative path
    ref = lax.top_k(x, L // 2)[0]
    assert out.shape == (N, C, L // 2)
    assert jnp.allclose(out, ref), "iterative path mismatch vs lax.top_k"

    # Also exercise the bitonic-sort path (k > 8) on another small shape.
    N2, C2, L2 = 2, 4, 48
    x2 = jax.random.normal(jax.random.PRNGKey(1), (N2, C2, L2), dtype=jnp.float32)
    out2 = jax.block_until_ready(kmax_pool(x2, k="half"))    # k = 24 -> bitonic path
    ref2 = lax.top_k(x2, L2 // 2)[0]
    assert out2.shape == (N2, C2, L2 // 2)
    assert jnp.allclose(out2, ref2), "bitonic path mismatch vs lax.top_k"

    print("KERNEL_OK")
</pallas_src>

<mosaic_0001>
module attributes {stable_mosaic.version = 11 : i64} {
  func.func @_kmax_iter_kernel(%arg0: i32, %arg1: memref<8x128xf32, #tpu.memory_space<vmem>>, %arg2: memref<8x128xf32, #tpu.memory_space<vmem>>) attributes {dimension_semantics = [#tpu.dimension_semantics<parallel>], iteration_bounds = array<i64: 1>, scalar_prefetch = 0 : i64, scratch_operands = 0 : i64, tpu.core_type = #tpu.core_type<tc>, window_params = [{transform_indices = @transform_0, window_bounds = array<i64: 8, 128>}, {transform_indices = @transform_1, window_bounds = array<i64: 8, 128>}]} {
    %c0 = arith.constant 0 : index
    %c0_0 = arith.constant 0 : index
    %0 = vector.load %arg1[%c0, %c0_0] : memref<8x128xf32, #tpu.memory_space<vmem>>, vector<8x128xf32>
    %1 = tpu.iota {dimensions = array<i32: 1>} : vector<8x128xi32>
    %2 = tpu.iota {dimensions = array<i32: 1>} : vector<8x128xi32>
    %cst = arith.constant 0xFF800000 : f32
    %3 = vector.broadcast %cst : f32 to vector<8x128xf32>
    %cst_1 = arith.constant dense<0xFF800000> : vector<8xf32>
    %4 = vector.multi_reduction <maximumf>, %0, %cst_1 [1] : vector<8x128xf32> to vector<8xf32>
    %5 = vector.shape_cast %4 : vector<8xf32> to vector<8x1xf32>
    %6 = vector.broadcast %5 : vector<8x1xf32> to vector<8x128xf32>
    %7 = arith.cmpf oeq, %0, %6 : vector<8x128xf32>
    %c128_i32 = arith.constant 128 : i32
    %8 = vector.broadcast %c128_i32 : i32 to vector<8x128xi32>
    %9 = arith.select %7, %1, %8 : vector<8x128xi1>, vector<8x128xi32>
    %cst_2 = arith.constant dense<2147483647> : vector<8xi32>
    %10 = vector.multi_reduction <minsi>, %9, %cst_2 [1] : vector<8x128xi32> to vector<8xi32>
    %11 = vector.shape_cast %10 : vector<8xi32> to vector<8x1xi32>
    %12 = vector.broadcast %11 : vector<8x1xi32> to vector<8x128xi32>
    %13 = arith.cmpi eq, %1, %12 : vector<8x128xi32>
    %cst_3 = arith.constant 0xFF800000 : f32
    %14 = vector.broadcast %cst_3 : f32 to vector<8x128xf32>
    %15 = arith.select %13, %14, %0 : vector<8x128xi1>, vector<8x128xf32>
    %c0_i32 = arith.constant 0 : i32
    %16 = vector.broadcast %c0_i32 : i32 to vector<8x128xi32>
    %17 = arith.cmpi eq, %2, %16 : vector<8x128xi32>
    %18 = vector.shape_cast %5 : vector<8x1xf32> to vector<8x1xf32>
    %19 = vector.broadcast %18 : vector<8x1xf32> to vector<8x128xf32>
    %20 = arith.select %17, %19, %3 : vector<8x128xi1>, vector<8x128xf32>
    %cst_4 = arith.constant dense<0xFF800000> : vector<8xf32>
    %21 = vector.multi_reduction <maximumf>, %15, %cst_4 [1] : vector<8x128xf32> to vector<8xf32>
    %22 = vector.shape_cast %21 : vector<8xf32> to vector<8x1xf32>
    %23 = vector.broadcast %22 : vector<8x1xf32> to vector<8x128xf32>
    %24 = arith.cmpf oeq, %15, %23 : vector<8x128xf32>
    %c128_i32_5 = arith.constant 128 : i32
    %25 = vector.broadcast %c128_i32_5 : i32 to vector<8x128xi32>
    %26 = arith.select %24, %1, %25 : vector<8x128xi1>, vector<8x128xi32>
    %cst_6 = arith.constant dense<2147483647> : vector<8xi32>
    %27 = vector.multi_reduction <minsi>, %26, %cst_6 [1] : vector<8x128xi32> to vector<8xi32>
    %28 = vector.shape_cast %27 : vector<8xi32> to vector<8x1xi32>
    %29 = vector.broadcast %28 : vector<8x1xi32> to vector<8x128xi32>
    %30 = arith.cmpi eq, %1, %29 : vector<8x128xi32>
    %cst_7 = arith.constant 0xFF800000 : f32
    %31 = vector.broadcast %cst_7 : f32 to vector<8x128xf32>
    %32 = arith.select %30, %31, %15 : vector<8x128xi1>, vector<8x128xf32>
    %c1_i32 = arith.constant 1 : i32
    %33 = vector.broadcast %c1_i32 : i32 to vector<8x128xi32>
    %34 = arith.cmpi eq, %2, %33 : vector<8x128xi32>
    %35 = vector.shape_cast %22 : vector<8x1xf32> to vector<8x1xf32>
    %36 = vector.broadcast %35 : vector<8x1xf32> to vector<8x128xf32>
    %37 = arith.select %34, %36, %20 : vector<8x128xi1>, vector<8x128xf32>
    %cst_8 = arith.constant dense<0xFF800000> : vector<8xf32>
    %38 = vector.multi_reduction <maximumf>, %32, %cst_8 [1] : vector<8x128xf32> to vector<8xf32>
    %39 = vector.shape_cast %38 : vector<8xf32> to vector<8x1xf32>
    %40 = vector.broadcast %39 : vector<8x1xf32> to vector<8x128xf32>
    %41 = arith.cmpf oeq, %32, %40 : vector<8x128xf32>
    %c128_i32_9 = arith.constant 128 : i32
    %42 = vector.broadcast %c128_i32_9 : i32 to vector<8x128xi32>
    %43 = arith.select %41, %1, %42 : vector<8x128xi1>, vector<8x128xi32>
    %cst_10 = arith.constant dense<2147483647> : vector<8xi32>
    %44 = vector.multi_reduction <minsi>, %43, %cst_10 [1] : vector<8x128xi32> to vector<8xi32>
    %45 = vector.shape_cast %44 : vector<8xi32> to vector<8x1xi32>
    %46 = vector.broadcast %45 : vector<8x1xi32> to vector<8x128xi32>
    %47 = arith.cmpi eq, %1, %46 : vector<8x128xi32>
    %cst_11 = arith.constant 0xFF800000 : f32
    %48 = vector.broadcast %cst_11 : f32 to vector<8x128xf32>
    %49 = arith.select %47, %48, %32 : vector<8x128xi1>, vector<8x128xf32>
    %c2_i32 = arith.constant 2 : i32
    %50 = vector.broadcast %c2_i32 : i32 to vector<8x128xi32>
    %51 = arith.cmpi eq, %2, %50 : vector<8x128xi32>
    %52 = vector.shape_cast %39 : vector<8x1xf32> to vector<8x1xf32>
    %53 = vector.broadcast %52 : vector<8x1xf32> to vector<8x128xf32>
    %54 = arith.select %51, %53, %37 : vector<8x128xi1>, vector<8x128xf32>
    %cst_12 = arith.constant dense<0xFF800000> : vector<8xf32>
    %55 = vector.multi_reduction <maximumf>, %49, %cst_12 [1] : vector<8x128xf32> to vector<8xf32>
    %56 = vector.shape_cast %55 : vector<8xf32> to vector<8x1xf32>
    %57 = vector.broadcast %56 : vector<8x1xf32> to vector<8x128xf32>
    %58 = arith.cmpf oeq, %49, %57 : vector<8x128xf32>
    %c128_i32_13 = arith.constant 128 : i32
    %59 = vector.broadcast %c128_i32_13 : i32 to vector<8x128xi32>
    %60 = arith.select %58, %1, %59 : vector<8x128xi1>, vector<8x128xi32>
    %cst_14 = arith.constant dense<2147483647> : vector<8xi32>
    %61 = vector.multi_reduction <minsi>, %60, %cst_14 [1] : vector<8x128xi32> to vector<8xi32>
    %62 = vector.shape_cast %61 : vector<8xi32> to vector<8x1xi32>
    %63 = vector.broadcast %62 : vector<8x1xi32> to vector<8x128xi32>
    %64 = arith.cmpi eq, %1, %63 : vector<8x128xi32>
    %cst_15 = arith.constant 0xFF800000 : f32
    %65 = vector.broadcast %cst_15 : f32 to vector<8x128xf32>
    %66 = arith.select %64, %65, %49 : vector<8x128xi1>, vector<8x128xf32>
    %c3_i32 = arith.constant 3 : i32
    %67 = vector.broadcast %c3_i32 : i32 to vector<8x128xi32>
    %68 = arith.cmpi eq, %2, %67 : vector<8x128xi32>
    %69 = vector.shape_cast %56 : vector<8x1xf32> to vector<8x1xf32>
    %70 = vector.broadcast %69 : vector<8x1xf32> to vector<8x128xf32>
    %71 = arith.select %68, %70, %54 : vector<8x128xi1>, vector<8x128xf32>
    %cst_16 = arith.constant dense<0xFF800000> : vector<8xf32>
    %72 = vector.multi_reduction <maximumf>, %66, %cst_16 [1] : vector<8x128xf32> to vector<8xf32>
    %73 = vector.shape_cast %72 : vector<8xf32> to vector<8x1xf32>
    %74 = vector.broadcast %73 : vector<8x1xf32> to vector<8x128xf32>
    %75 = arith.cmpf oeq, %66, %74 : vector<8x128xf32>
    %c128_i32_17 = arith.constant 128 : i32
    %76 = vector.broadcast %c128_i32_17 : i32 to vector<8x128xi32>
    %77 = arith.select %75, %1, %76 : vector<8x128xi1>, vector<8x128xi32>
    %cst_18 = arith.constant dense<2147483647> : vector<8xi32>
    %78 = vector.multi_reduction <minsi>, %77, %cst_18 [1] : vector<8x128xi32> to vector<8xi32>
    %79 = vector.shape_cast %78 : vector<8xi32> to vector<8x1xi32>
    %80 = vector.broadcast %79 : vector<8x1xi32> to vector<8x128xi32>
    %81 = arith.cmpi eq, %1, %80 : vector<8x128xi32>
    %cst_19 = arith.constant 0xFF800000 : f32
    %82 = vector.broadcast %cst_19 : f32 to vector<8x128xf32>
    %83 = arith.select %81, %82, %66 : vector<8x128xi1>, vector<8x128xf32>
    %c4_i32 = arith.constant 4 : i32
    %84 = vector.broadcast %c4_i32 : i32 to vector<8x128xi32>
    %85 = arith.cmpi eq, %2, %84 : vector<8x128xi32>
    %86 = vector.shape_cast %73 : vector<8x1xf32> to vector<8x1xf32>
    %87 = vector.broadcast %86 : vector<8x1xf32> to vector<8x128xf32>
    %88 = arith.select %85, %87, %71 : vector<8x128xi1>, vector<8x128xf32>
    %cst_20 = arith.constant dense<0xFF800000> : vector<8xf32>
    %89 = vector.multi_reduction <maximumf>, %83, %cst_20 [1] : vector<8x128xf32> to vector<8xf32>
    %90 = vector.shape_cast %89 : vector<8xf32> to vector<8x1xf32>
    %91 = vector.broadcast %90 : vector<8x1xf32> to vector<8x128xf32>
    %92 = arith.cmpf oeq, %83, %91 : vector<8x128xf32>
    %c128_i32_21 = arith.constant 128 : i32
    %93 = vector.broadcast %c128_i32_21 : i32 to vector<8x128xi32>
    %94 = arith.select %92, %1, %93 : vector<8x128xi1>, vector<8x128xi32>
    %cst_22 = arith.constant dense<2147483647> : vector<8xi32>
    %95 = vector.multi_reduction <minsi>, %94, %cst_22 [1] : vector<8x128xi32> to vector<8xi32>
    %96 = vector.shape_cast %95 : vector<8xi32> to vector<8x1xi32>
    %97 = vector.broadcast %96 : vector<8x1xi32> to vector<8x128xi32>
    %98 = arith.cmpi eq, %1, %97 : vector<8x128xi32>
    %cst_23 = arith.constant 0xFF800000 : f32
    %99 = vector.broadcast %cst_23 : f32 to vector<8x128xf32>
    %100 = arith.select %98, %99, %83 : vector<8x128xi1>, vector<8x128xf32>
    %c5_i32 = arith.constant 5 : i32
    %101 = vector.broadcast %c5_i32 : i32 to vector<8x128xi32>
    %102 = arith.cmpi eq, %2, %101 : vector<8x128xi32>
    %103 = vector.shape_cast %90 : vector<8x1xf32> to vector<8x1xf32>
    %104 = vector.broadcast %103 : vector<8x1xf32> to vector<8x128xf32>
    %105 = arith.select %102, %104, %88 : vector<8x128xi1>, vector<8x128xf32>
    %cst_24 = arith.constant dense<0xFF800000> : vector<8xf32>
    %106 = vector.multi_reduction <maximumf>, %100, %cst_24 [1] : vector<8x128xf32> to vector<8xf32>
    %107 = vector.shape_cast %106 : vector<8xf32> to vector<8x1xf32>
    %108 = vector.broadcast %107 : vector<8x1xf32> to vector<8x128xf32>
    %109 = arith.cmpf oeq, %100, %108 : vector<8x128xf32>
    %c128_i32_25 = arith.constant 128 : i32
    %110 = vector.broadcast %c128_i32_25 : i32 to vector<8x128xi32>
    %111 = arith.select %109, %1, %110 : vector<8x128xi1>, vector<8x128xi32>
    %cst_26 = arith.constant dense<2147483647> : vector<8xi32>
    %112 = vector.multi_reduction <minsi>, %111, %cst_26 [1] : vector<8x128xi32> to vector<8xi32>
    %113 = vector.shape_cast %112 : vector<8xi32> to vector<8x1xi32>
    %114 = vector.broadcast %113 : vector<8x1xi32> to vector<8x128xi32>
    %115 = arith.cmpi eq, %1, %114 : vector<8x128xi32>
    %cst_27 = arith.constant 0xFF800000 : f32
    %116 = vector.broadcast %cst_27 : f32 to vector<8x128xf32>
    %117 = arith.select %115, %116, %100 : vector<8x128xi1>, vector<8x128xf32>
    %c6_i32 = arith.constant 6 : i32
    %118 = vector.broadcast %c6_i32 : i32 to vector<8x128xi32>
    %119 = arith.cmpi eq, %2, %118 : vector<8x128xi32>
    %120 = vector.shape_cast %107 : vector<8x1xf32> to vector<8x1xf32>
    %121 = vector.broadcast %120 : vector<8x1xf32> to vector<8x128xf32>
    %122 = arith.select %119, %121, %105 : vector<8x128xi1>, vector<8x128xf32>
    %cst_28 = arith.constant dense<0xFF800000> : vector<8xf32>
    %123 = vector.multi_reduction <maximumf>, %117, %cst_28 [1] : vector<8x128xf32> to vector<8xf32>
    %124 = vector.shape_cast %123 : vector<8xf32> to vector<8x1xf32>
    %c7_i32 = arith.constant 7 : i32
    %125 = vector.broadcast %c7_i32 : i32 to vector<8x128xi32>
    %126 = arith.cmpi eq, %2, %125 : vector<8x128xi32>
    %127 = vector.shape_cast %124 : vector<8x1xf32> to vector<8x1xf32>
    %128 = vector.broadcast %127 : vector<8x1xf32> to vector<8x128xf32>
    %129 = arith.select %126, %128, %122 : vector<8x128xi1>, vector<8x128xf32>
    %c0_29 = arith.constant 0 : index
    %c0_30 = arith.constant 0 : index
    %130 = vector.load %arg2[%c0_29, %c0_30] : memref<8x128xf32, #tpu.memory_space<vmem>>, vector<8x128xf32>
    tpu.vector_store %arg2[%c0_29, %c0_30], %129 {strides = array<i32>} : memref<8x128xf32, #tpu.memory_space<vmem>>, vector<8x128xf32>,
    return
  }
  func.func @transform_0(%arg0: i32) -> (i32, i32) {
    %c0_i32 = arith.constant 0 : i32
    %c0_i32_0 = arith.constant 0 : i32
    return %arg0, %c0_i32 : i32, i32
  }
  func.func @transform_1(%arg0: i32) -> (i32, i32) {
    %c0_i32 = arith.constant 0 : i32
    %c0_i32_0 = arith.constant 0 : i32
    return %arg0, %c0_i32 : i32, i32
  }
}

</mosaic_0001>

<bundles_post_ra>
// kernel: tpu_custom_call.1
= control target key start
LH: loop header
LB: loop body
LE: loop exit
PB: predicated region body
PF: predicated region fallthrough
CT: control target
= control target key end

     0   :  { %6 = vsyncpa [#allocation3], 0  ;;  %s328_s0 = inlined_call_operand.hbm [shape: f32[8,128], index: 0, kind: input, shape index: {}]   ;;  %s329_s1 = inlined_call_operand.hbm [shape: f32[8,128], index: 1, kind: output, shape index: {}]  }
   0x1   :  { %7 = vsyncpa [#allocation4], 0  ;;  %s248_s6 = smov [#allocation2]   ;;  %s200_s10 = scalar_lea.hbm %s328_s0, 128 }
   0x2   :  { %s14_s7 = sshll.u32 %s248_s6, 4  ;;  %p201_p0 = scmp.ne.s32.totalorder %s328_s0, %s200_s10  ;;  %s15_s7 = int_to_ptr.vmem [resolvable:$true] %s14_s7 }
   0x3   :  { %p204_p1 = scmp.lt.u32.totalorder %s200_s10, %s328_s0 }
   0x5   :  { %p206_p2 = pnand %p204_p1, %p201_p0 }
   0x7   :  { %209 = shalt.err (!%p206_p2)
}
   0x8   :  { %s210_s15 = scalar_lea.vmem %s15_s7, 128  ;;  %p215_p4 = scmp.lt.s32.totalorder %s15_s7, %s15_s7 }
   0x9   :  { %p211_p3 = scmp.ne.s32.totalorder %s15_s7, %s210_s15  ;;  %p216_p5 = scmp.lt.s32.totalorder %s210_s15, %s210_s15 }
   0xb   :  { %p217_p6 = por %p216_p5, %p215_p4 }
   0xd   :  { %p218_p7 = pnand %p217_p6, %p211_p3 }
   0xf   :  { %221 = shalt.err (!%p218_p7)
}
  0x10   :  { %17 = dma.hbm_to_vmem [thread:$0]  %s328_s0, 128, %s15_s7, [#allocation3]  }
  0x11   :  { %244 = dma.done.wait [#allocation3], 128  }
  0x12   :  { %245 = vsyncadd [#allocation3], 4294967168  ;;  %v21_v0 = vld [vmem:[#allocation2] sm:$0xff]  ;;  %v22_v1 = vlaneseq  ;;  %s249_s0 = smov [#allocation5]  }
  0x13   :  { %24 = vmax.xlane.f32.xlu0 %v21_v0  ;;  %s189_s18 = sshll.u32 %s249_s0, 4  ;;  %s190_s18 = int_to_ptr.vmem [resolvable:$true] %s189_s18 }
  0x14   :  { %v272_v2 = vand.u32 127, %v22_v1  ;;  %s222_s19 = scalar_lea.vmem %s190_s18, 128  ;;  %p227_p9 = scmp.lt.s32.totalorder %s190_s18, %s190_s18 }
  0x15   :  { %p223_p8 = scmp.ne.s32.totalorder %s190_s18, %s222_s19  ;;  %p228_p10 = scmp.lt.s32.totalorder %s222_s19, %s222_s19 }
  0x17   :  { %p229_p11 = por %p228_p10, %p227_p9 }
  0x19   :  { %p230_p12 = pnand %p229_p11, %p223_p8 }
  0xa0   :  { %v274_v3 = vpop.xlane.xlu0 %24 }
  0xa1   :  { %vm26_vm0 = vcmp.eq.f32.partialorder %v21_v0, %v274_v3 }
  0xa2   :  { %v27_v4 = vsel %vm26_vm0, %v272_v2, 128 }
  0xa3   :  { %v29_v5 = vshra.s32 %v27_v4, 16  ;;  %v28_v7 = vand.u32 65535, %v27_v4 }
  0xa5   :  { %v31_v6 = vcvt.s32.f32 %v29_v5  ;;  %v30_v9 = vcvt.s32.f32 %v28_v7 }
  0xa7   :  { %32 = vmin.xlane.f32.xlu0 %v31_v6 }
 0x134   :  { %v33_v8 = vpop.xlane.xlu0 %32 }
 0x135   :  { %vm34_vm1 = vcmp.eq.f32.partialorder %v31_v6, %v33_v8  ;;  %v39_v11 = vcvt.f32.s32 %v33_v8 }
 0x136   :  { %v35_v10 = vsel %vm34_vm1, %v30_v9, inf }
 0x137   :  { %36 = vmin.xlane.f32.xlu1 %v35_v10  ;;  %v40_v13 = vshll.u32 %v39_v11, 16 }
 0x1c4   :  { %v37_v12 = vpop.xlane.xlu1 %36 }
 0x1c5   :  { %v38_v14 = vcvt.f32.s32 %v37_v12 }
 0x1c7   :  { %v41_v15 = vadd.s32 %v40_v13, %v38_v14 }
 0x1c9   :  { %vm42_vm2 = vcmp.eq.s32.totalorder %v272_v2, %v41_v15 }
 0x1ca   :  { %v43_v16 = vsel %vm42_vm2, -inf, %v21_v0 }
 0x1cb   :  { %46 = vmax.xlane.f32.xlu1 %v43_v16 }
 0x258   :  { %v279_v17 = vpop.xlane.xlu1 %46 }
 0x259   :  { %vm48_vm3 = vcmp.eq.f32.partialorder %v43_v16, %v279_v17 }
 0x25a   :  { %v49_v18 = vsel %vm48_vm3, %v272_v2, 128 }
 0x25b   :  { %v51_v19 = vshra.s32 %v49_v18, 16  ;;  %v50_v21 = vand.u32 65535, %v49_v18 }
 0x25d   :  { %v53_v20 = vcvt.s32.f32 %v51_v19  ;;  %v52_v23 = vcvt.s32.f32 %v50_v21 }
 0x25f   :  { %54 = vmin.xlane.f32.xlu0 %v53_v20 }
 0x2ec   :  { %v55_v22 = vpop.xlane.xlu0 %54 }
 0x2ed   :  { %vm56_vm4 = vcmp.eq.f32.partialorder %v53_v20, %v55_v22  ;;  %v61_v25 = vcvt.f32.s32 %v55_v22 }
 0x2ee   :  { %v57_v24 = vsel %vm56_vm4, %v52_v23, inf }
 0x2ef   :  { %58 = vmin.xlane.f32.xlu1 %v57_v24  ;;  %v62_v27 = vshll.u32 %v61_v25, 16 }
 0x37c   :  { %v59_v26 = vpop.xlane.xlu1 %58 }
 0x37d   :  { %v60_v28 = vcvt.f32.s32 %v59_v26 }
 0x37f   :  { %v63_v29 = vadd.s32 %v62_v27, %v60_v28 }
 0x381   :  { %vm64_vm5 = vcmp.eq.s32.totalorder %v272_v2, %v63_v29 }
 0x382   :  { %v65_v30 = vsel %vm64_vm5, -inf, %v43_v16  ;;  %vm44_vm5 = vcmp.eq.s32.totalorder %v272_v2, 0 }
 0x383   :  { %68 = vmax.xlane.f32.xlu0 %v65_v30 }
 0x410   :  { %v284_v31 = vpop.xlane.xlu0 %68 }
 0x411   :  { %vm70_vm6 = vcmp.eq.f32.partialorder %v65_v30, %v284_v31 }
 0x412   :  { %v71_v32 = vsel %vm70_vm6, %v272_v2, 128  ;;  %vm66_vm6 = vcmp.eq.s32.totalorder %v272_v2, 1 }
 0x413   :  { %v73_v33 = vshra.s32 %v71_v32, 16  ;;  %v72_v35 = vand.u32 65535, %v71_v32 }
 0x415   :  { %v75_v34 = vcvt.s32.f32 %v73_v33  ;;  %v74_v37 = vcvt.s32.f32 %v72_v35 }
 0x417   :  { %76 = vmin.xlane.f32.xlu1 %v75_v34 }
 0x4a4   :  { %v77_v36 = vpop.xlane.xlu1 %76 }
 0x4a5   :  { %vm78_vm7 = vcmp.eq.f32.partialorder %v75_v34, %v77_v36  ;;  %v83_v39 = vcvt.f32.s32 %v77_v36 }
 0x4a6   :  { %v79_v38 = vsel %vm78_vm7, %v74_v37, inf  ;;  %vm88_vm7 = vcmp.eq.s32.totalorder %v272_v2, 2 }
 0x4a7   :  { %80 = vmin.xlane.f32.xlu0 %v79_v38  ;;  %v84_v41 = vshll.u32 %v83_v39, 16 }
 0x534   :  { %v81_v40 = vpop.xlane.xlu0 %80 }
 0x535   :  { %v82_v42 = vcvt.f32.s32 %v81_v40 }
 0x537   :  { %v85_v43 = vadd.s32 %v84_v41, %v82_v42  ;;  %v45_v41 = vsel %vm44_vm5, %v274_v3, -inf }
 0x538   :  { %v67_v42 = vsel %vm66_vm6, %v279_v17, %v45_v41 }
 0x539   :  { %vm86_vm8 = vcmp.eq.s32.totalorder %v272_v2, %v85_v43  ;;  %v89_v43 = vsel %vm88_vm7, %v284_v31, %v67_v42 }
 0x53a   :  { %v87_v44 = vsel %vm86_vm8, -inf, %v65_v30  ;;  %vm110_vm8 = vcmp.eq.s32.totalorder %v272_v2, 3 }
 0x53b   :  { %90 = vmax.xlane.f32.xlu1 %v87_v44 }
 0x5c8   :  { %v289_v45 = vpop.xlane.xlu1 %90 }
 0x5c9   :  { %vm92_vm9 = vcmp.eq.f32.partialorder %v87_v44, %v289_v45 }
 0x5ca   :  { %v93_v46 = vsel %vm92_vm9, %v272_v2, 128  ;;  %vm132_vm9 = vcmp.eq.s32.totalorder %v272_v2, 4 }
 0x5cb   :  { %v95_v47 = vshra.s32 %v93_v46, 16  ;;  %v94_v49 = vand.u32 65535, %v93_v46 }
 0x5cd   :  { %v97_v48 = vcvt.s32.f32 %v95_v47  ;;  %v96_v51 = vcvt.s32.f32 %v94_v49 }
 0x5cf   :  { %98 = vmin.xlane.f32.xlu0 %v97_v48 }
 0x65c   :  { %v99_v50 = vpop.xlane.xlu0 %98 }
 0x65d   :  { %vm100_vm10 = vcmp.eq.f32.partialorder %v97_v48, %v99_v50  ;;  %v105_v53 = vcvt.f32.s32 %v99_v50 }
 0x65e   :  { %v101_v52 = vsel %vm100_vm10, %v96_v51, inf  ;;  %vm154_vm10 = vcmp.eq.s32.totalorder %v272_v2, 5 }
 0x65f   :  { %102 = vmin.xlane.f32.xlu1 %v101_v52  ;;  %v106_v55 = vshll.u32 %v105_v53, 16 }
 0x6ec   :  { %v103_v54 = vpop.xlane.xlu1 %102 }
 0x6ed   :  { %v104_v56 = vcvt.f32.s32 %v103_v54 }
 0x6ef   :  { %v107_v57 = vadd.s32 %v106_v55, %v104_v56 }
 0x6f1   :  { %vm108_vm11 = vcmp.eq.s32.totalorder %v272_v2, %v107_v57 }
 0x6f2   :  { %v109_v58 = vsel %vm108_vm11, -inf, %v87_v44  ;;  %v111_v44 = vsel %vm110_vm8, %v289_v45, %v89_v43  ;;  %vm176_vm11 = vcmp.eq.s32.totalorder %v272_v2, 6 }
 0x6f3   :  { %112 = vmax.xlane.f32.xlu0 %v109_v58 }
 0x780   :  { %v294_v59 = vpop.xlane.xlu0 %112 }
 0x781   :  { %vm114_vm12 = vcmp.eq.f32.partialorder %v109_v58, %v294_v59  ;;  %v133_v46 = vsel %vm132_vm9, %v294_v59, %v111_v44 }
 0x782   :  { %v115_v60 = vsel %vm114_vm12, %v272_v2, 128  ;;  %vm180_vm12 = vcmp.eq.s32.totalorder %v272_v2, 7 }
 0x783   :  { %v117_v61 = vshra.s32 %v115_v60, 16  ;;  %v116_v63 = vand.u32 65535, %v115_v60 }
 0x785   :  { %v119_v62 = vcvt.s32.f32 %v117_v61  ;;  %v118_v1 = vcvt.s32.f32 %v116_v63 }
 0x787   :  { %120 = vmin.xlane.f32.xlu1 %v119_v62 }
 0x814   :  { %v121_v0 = vpop.xlane.xlu1 %120 }
 0x815   :  { %vm122_vm13 = vcmp.eq.f32.partialorder %v119_v62, %v121_v0  ;;  %v127_v5 = vcvt.f32.s32 %v121_v0 }
 0x816   :  { %v123_v4 = vsel %vm122_vm13, %v118_v1, inf }
 0x817   :  { %124 = vmin.xlane.f32.xlu0 %v123_v4  ;;  %v128_v7 = vshll.u32 %v127_v5, 16 }
 0x8a4   :  { %v125_v6 = vpop.xlane.xlu0 %124 }
 0x8a5   :  { %v126_v8 = vcvt.f32.s32 %v125_v6 }
 0x8a7   :  { %v129_v9 = vadd.s32 %v128_v7, %v126_v8 }
 0x8a9   :  { %vm130_vm14 = vcmp.eq.s32.totalorder %v272_v2, %v129_v9 }
 0x8aa   :  { %v131_v10 = vsel %vm130_vm14, -inf, %v109_v58 }
 0x8ab   :  { %134 = vmax.xlane.f32.xlu1 %v131_v10 }
 0x938   :  { %v135_v11 = vpop.xlane.xlu1 %134 }
 0x939   :  { %vm136_vm15 = vcmp.eq.f32.partialorder %v131_v10, %v135_v11  ;;  %v155_v3 = vsel %vm154_vm10, %v135_v11, %v133_v46 }
 0x93a   :  { %v137_v12 = vsel %vm136_vm15, %v272_v2, 128 }
 0x93b   :  { %v139_v13 = vshra.s32 %v137_v12, 16  ;;  %v138_v15 = vand.u32 65535, %v137_v12 }
 0x93d   :  { %v141_v14 = vcvt.s32.f32 %v139_v13  ;;  %v140_v18 = vcvt.s32.f32 %v138_v15 }
 0x93f   :  { %142 = vmin.xlane.f32.xlu0 %v141_v14 }
 0x9cc   :  { %v143_v16 = vpop.xlane.xlu0 %142 }
 0x9cd   :  { %vm144_vm0 = vcmp.eq.f32.partialorder %v141_v14, %v143_v16  ;;  %v149_v20 = vcvt.f32.s32 %v143_v16 }
 0x9ce   :  { %v145_v19 = vsel %vm144_vm0, %v140_v18, inf }
 0x9cf   :  { %146 = vmin.xlane.f32.xlu1 %v145_v19  ;;  %v150_v22 = vshll.u32 %v149_v20, 16 }
 0xa5c   :  { %v147_v21 = vpop.xlane.xlu1 %146 }
 0xa5d   :  { %v148_v23 = vcvt.f32.s32 %v147_v21 }
 0xa5f   :  { %v151_v24 = vadd.s32 %v150_v22, %v148_v23 }
 0xa61   :  { %vm152_vm1 = vcmp.eq.s32.totalorder %v272_v2, %v151_v24 }
 0xa62   :  { %v153_v25 = vsel %vm152_vm1, -inf, %v131_v10 }
 0xa63   :  { %156 = vmax.xlane.f32.xlu0 %v153_v25 }
 0xaf0   :  { %v157_v26 = vpop.xlane.xlu0 %156 }
 0xaf1   :  { %vm158_vm2 = vcmp.eq.f32.partialorder %v153_v25, %v157_v26  ;;  %v177_v47 = vsel %vm176_vm11, %v157_v26, %v155_v3 }
 0xaf2   :  { %v159_v27 = vsel %vm158_vm2, %v272_v2, 128 }
 0xaf3   :  { %v161_v28 = vshra.s32 %v159_v27, 16  ;;  %v160_v30 = vand.u32 65535, %v159_v27 }
 0xaf5   :  { %v163_v29 = vcvt.s32.f32 %v161_v28  ;;  %v162_v33 = vcvt.s32.f32 %v160_v30 }
 0xaf7   :  { %164 = vmin.xlane.f32.xlu1 %v163_v29 }
 0xb84   :  { %v165_v32 = vpop.xlane.xlu1 %164 }
 0xb85   :  { %vm166_vm3 = vcmp.eq.f32.partialorder %v163_v29, %v165_v32  ;;  %v171_v35 = vcvt.f32.s32 %v165_v32 }
 0xb86   :  { %v167_v34 = vsel %vm166_vm3, %v162_v33, inf }
 0xb87   :  { %168 = vmin.xlane.f32.xlu0 %v167_v34  ;;  %v172_v37 = vshll.u32 %v171_v35, 16 }
 0xc14   :  { %v169_v36 = vpop.xlane.xlu0 %168 }
 0xc15   :  { %v170_v38 = vcvt.f32.s32 %v169_v36 }
 0xc17   :  { %v173_v39 = vadd.s32 %v172_v37, %v170_v38 }
 0xc19   :  { %vm174_vm4 = vcmp.eq.s32.totalorder %v272_v2, %v173_v39 }
 0xc1a   :  { %v175_v40 = vsel %vm174_vm4, -inf, %v153_v25 }
 0xc1b   :  { %178 = vmax.xlane.f32.xlu1 %v175_v40 }
 0xca8   :  { %v179_v48 = vpop.xlane.xlu1 %178 }
 0xca9   :  { %v181_v17 = vsel %vm180_vm12, %v179_v48, %v177_v47 }
 0xcaa   :  { %182 = vst [vmem:[#allocation5] sm:$0xff] %v181_v17 }
 0xcab   :  { %233 = shalt.err (!%p230_p12)
}
 0xcac   :  { %s234_s22 = scalar_lea.hbm %s329_s1, 128 }
 0xcad   :  { %p235_p13 = scmp.ne.s32.totalorder %s329_s1, %s234_s22  ;;  %p238_p0 = scmp.lt.u32.totalorder %s234_s22, %s329_s1 }
 0xcaf   :  { %p240_p1 = pnand %p238_p0, %p235_p13 }
 0xcb1   :  { %243 = shalt.err (!%p240_p1)
}
 0xcb2   :  { %192 = dma.vmem_to_hbm [thread:$0]  %s190_s18, 128, %s329_s1, [#allocation4]  }
 0xcb3   :  { %246 = dma.done.wait [#allocation4], 128  }
 0xcb4   :  { %247 = vsyncadd [#allocation4], 4294967168 }
 0xcb5   :  { %196 = vsyncpa [#allocation3], 1 }
 0xcb6   :  { %197 = vsyncpa [#allocation4], 1 }

</bundles_post_ra>
